<compile_context>
chip_gen: v7x
topology: tpu7x:2x2x1
jax: 0.10.0
libtpu: 0.0.40
codegen_flags: <defaults>
</compile_context>

<pallas_src>
import functools

import jax
import jax.numpy as jnp
from jax.experimental import pallas as pl
from jax.experimental.pallas import tpu as pltpu


def _sigmoid(x):
    # EUP-friendly sigmoid: tanh lowers to the EUP slot; avoids a VPU divide.
    return 0.5 * jnp.tanh(0.5 * x) + 0.5


def _lstm_cell_kernel(z_ref, c_ref, wbig_ref, b_ref, wco_ref, out_ref, *, hidden_dim):
    H = hidden_dim
    z = z_ref[...]
    c_prev = c_ref[...]

    # One fused matmul for all four gate pre-activations -> (B, 4H) slab.
    gates = jnp.dot(z, wbig_ref[...], preferred_element_type=jnp.float32) + b_ref[...]

    i = _sigmoid(gates[:, 0 * H:1 * H])
    f = _sigmoid(gates[:, 1 * H:2 * H])
    g = jnp.tanh(gates[:, 2 * H:3 * H])
    c_next = f * c_prev + i * g

    # Output gate needs the peephole term on c_next (second, unavoidable matmul).
    o_pre = gates[:, 3 * H:4 * H] + jnp.dot(
        c_next, wco_ref[...], preferred_element_type=jnp.float32)
    tanh_c = jnp.tanh(c_next)
    o = _sigmoid(o_pre) * tanh_c      # output_gate() returns o_sig * tanh(c_next)
    h_next = o * tanh_c               # hidden_memory(): o * tanh(c_next)  (module quirk kept)

    # Single lane-dense (B, 4H) = (B, 128) store; wrapper slices it back apart.
    out_ref[...] = jnp.concatenate([o, h_next, c_next, jnp.zeros_like(o)], axis=-1)


def fuse_params(p, input_dim, hidden_dim):
    """Fold the 11 per-gate linears into one block weight + one peephole weight."""
    H = hidden_dim
    zeros_h = jnp.zeros((H, H), jnp.float32)
    w_x = jnp.concatenate([p["wxi"], p["wxf"], p["wxc"], p["wxo"]], axis=1)  # (D_in, 4H)
    w_h = jnp.concatenate([p["whi"], p["whf"], p["whc"], p["who"]], axis=1)  # (H,    4H)
    w_c = jnp.concatenate([p["wci"], p["wcf"], zeros_h, zeros_h], axis=1)    # (H,    4H)
    w_big = jnp.concatenate([w_x, w_h, w_c], axis=0)                         # (D_in+2H, 4H)
    b = jnp.concatenate([p["bi"], p["bf"], p["bc"], p["bo"]], axis=1)        # (1, 4H)
    return {"w_big": w_big, "b": b, "wco": p["wco"]}


def lstm_cell(x, h, c, fused):
    """Single LSTM-cell step via one Pallas call. All operands live in VMEM."""
    B, _ = x.shape
    H = c.shape[1]

    z = jnp.concatenate([x, h, c], axis=1)          # (B, D_in + 2H)
    inputs = (z, c, fused["w_big"], fused["b"], fused["wco"])

    def full_spec(a):
        shape = a.shape
        return pl.BlockSpec(shape, lambda: (0,) * len(shape),
                            memory_space=pltpu.MemorySpace.VMEM)

    packed = pl.pallas_call(
        functools.partial(_lstm_cell_kernel, hidden_dim=H),
        out_shape=jax.ShapeDtypeStruct((B, 4 * H), jnp.float32),
        in_specs=[full_spec(a) for a in inputs],
        out_specs=pl.BlockSpec((B, 4 * H), lambda: (0, 0),
                               memory_space=pltpu.MemorySpace.VMEM),
    )(*inputs)

    o = packed[:, 0 * H:1 * H]
    h_next = packed[:, 1 * H:2 * H]
    c_next = packed[:, 2 * H:3 * H]
    return o, (h_next, c_next)


# TODO(synk): for a real sequence workload, move the time loop inside one pallas_call
# (grid over T marked "arbitrary", weights resident in VMEM, h/c carried in scratch,
# x_t streamed via its BlockSpec) and cast matmul operands to bf16 on v6e/v7x.


def init_params(key, input_dim, hidden_dim):
    """Deterministic synthetic parameters. Linear weights stored transposed (in, out)."""
    ks = jax.random.split(key, 22)
    s = 0.1

    def w(k, din, dout):
        return s * jax.random.normal(k, (din, dout), dtype=jnp.float32)

    def b(k, dout):
        return s * jax.random.normal(k, (1, dout), dtype=jnp.float32)

    # Biases of the linears feeding each gate are pre-summed (mathematically identical).
    params = dict(
        wxi=w(ks[0], input_dim, hidden_dim),
        whi=w(ks[1], hidden_dim, hidden_dim),
        wci=w(ks[2], hidden_dim, hidden_dim),
        bi=b(ks[3], hidden_dim) + b(ks[4], hidden_dim) + b(ks[5], hidden_dim),
        wxf=w(ks[6], input_dim, hidden_dim),
        whf=w(ks[7], hidden_dim, hidden_dim),
        wcf=w(ks[8], hidden_dim, hidden_dim),
        bf=b(ks[9], hidden_dim) + b(ks[10], hidden_dim) + b(ks[11], hidden_dim),
        wxc=w(ks[12], input_dim, hidden_dim),
        whc=w(ks[13], hidden_dim, hidden_dim),
        bc=b(ks[14], hidden_dim) + b(ks[15], hidden_dim),
        wxo=w(ks[16], input_dim, hidden_dim),
        who=w(ks[17], hidden_dim, hidden_dim),
        wco=w(ks[18], hidden_dim, hidden_dim),
        bo=b(ks[19], hidden_dim) + b(ks[20], hidden_dim) + b(ks[21], hidden_dim),
    )
    return params


def lstm_cell_ref(x, h, c, p):
    """Pure-JAX reference for validation (mirrors the PyTorch forward)."""
    i = jax.nn.sigmoid(x @ p["wxi"] + h @ p["whi"] + c @ p["wci"] + p["bi"])
    f = jax.nn.sigmoid(x @ p["wxf"] + h @ p["whf"] + c @ p["wcf"] + p["bf"])
    c_next = f * c + i * jnp.tanh(x @ p["wxc"] + h @ p["whc"] + p["bc"])
    o = jax.nn.sigmoid(x @ p["wxo"] + h @ p["who"] + c_next @ p["wco"] + p["bo"]) * jnp.tanh(c_next)
    h_next = o * jnp.tanh(c_next)
    return o, (h_next, c_next)


if __name__ == "__main__":
    B, INPUT_DIM, HIDDEN_DIM = 8, 4, 32

    key = jax.random.PRNGKey(0)
    k_x1, k_x2, k_p = jax.random.split(key, 3)
    x1 = jax.random.normal(k_x1, (B, INPUT_DIM), dtype=jnp.float32)
    x2 = jax.random.normal(k_x2, (B, INPUT_DIM), dtype=jnp.float32)
    h0 = jnp.zeros((B, HIDDEN_DIM), dtype=jnp.float32)   # init_hidden_cell
    c0 = jnp.zeros((B, HIDDEN_DIM), dtype=jnp.float32)

    params = init_params(k_p, INPUT_DIM, HIDDEN_DIM)
    fused = fuse_params(params, INPUT_DIM, HIDDEN_DIM)

    # Step 1: zero memory (forward(x) with memory=None).
    o1, (h1, c1) = lstm_cell(x1, h0, c0, fused)
    # Step 2: recurrent step exercising the c-peephole paths.
    o2, (h2, c2) = lstm_cell(x2, h1, c1, fused)
    jax.block_until_ready((o1, h1, c1, o2, h2, c2))

    o1_r, (h1_r, c1_r) = lstm_cell_ref(x1, h0, c0, params)
    o2_r, (h2_r, c2_r) = lstm_cell_ref(x2, h1_r, c1_r, params)

    assert jnp.allclose(o1, o1_r, atol=3e-5), "step1 output gate mismatch"
    assert jnp.allclose(h1, h1_r, atol=3e-5), "step1 hidden mismatch"
    assert jnp.allclose(c1, c1_r, atol=3e-5), "step1 cell mismatch"
    assert jnp.allclose(o2, o2_r, atol=3e-5), "step2 output gate mismatch"
    assert jnp.allclose(h2, h2_r, atol=3e-5), "step2 hidden mismatch"
    assert jnp.allclose(c2, c2_r, atol=3e-5), "step2 cell mismatch"

    print("KERNEL_OK")
</pallas_src>

<mosaic_0001>
module attributes {stable_mosaic.version = 11 : i64} {
  func.func @_lstm_cell_kernel(%arg0: memref<8x68xf32, #tpu.memory_space<vmem>>, %arg1: memref<8x32xf32, #tpu.memory_space<vmem>>, %arg2: memref<68x128xf32, #tpu.memory_space<vmem>>, %arg3: memref<1x128xf32, #tpu.memory_space<vmem>>, %arg4: memref<32x32xf32, #tpu.memory_space<vmem>>, %arg5: memref<8x128xf32, #tpu.memory_space<vmem>>) attributes {dimension_semantics = [], scalar_prefetch = 0 : i64, scratch_operands = 0 : i64, tpu.core_type = #tpu.core_type<tc>} {
    %c0 = arith.constant 0 : index
    %c0_0 = arith.constant 0 : index
    %0 = vector.load %arg0[%c0, %c0_0] : memref<8x68xf32, #tpu.memory_space<vmem>>, vector<8x68xf32>
    %c0_1 = arith.constant 0 : index
    %c0_2 = arith.constant 0 : index
    %1 = vector.load %arg1[%c0_1, %c0_2] : memref<8x32xf32, #tpu.memory_space<vmem>>, vector<8x32xf32>
    %c0_3 = arith.constant 0 : index
    %c0_4 = arith.constant 0 : index
    %2 = vector.load %arg2[%c0_3, %c0_4] : memref<68x128xf32, #tpu.memory_space<vmem>>, vector<68x128xf32>
    %cst = arith.constant dense<0.000000e+00> : vector<8x128xf32>
    %3 = tpu.matmul %0, %2, %cst {dimension_numbers = #tpu.dot_dimension_numbers<[1], [0], [0], [1], [0, 0, 1, 1], [], []>} : vector<8x68xf32>, vector<68x128xf32>, vector<8x128xf32> -> vector<8x128xf32>
    %c0_5 = arith.constant 0 : index
    %c0_6 = arith.constant 0 : index
    %4 = vector.load %arg3[%c0_5, %c0_6] : memref<1x128xf32, #tpu.memory_space<vmem>>, vector<1x128xf32>
    %5 = vector.broadcast %4 : vector<1x128xf32> to vector<8x128xf32>
    %6 = arith.addf %3, %5 : vector<8x128xf32>
    %7 = vector.extract_strided_slice %6 {offsets = [0, 0], sizes = [8, 32], strides = [1, 1]} : vector<8x128xf32> to vector<8x32xf32>
    %cst_7 = arith.constant 5.000000e-01 : f32
    %8 = vector.broadcast %cst_7 : f32 to vector<8x32xf32>
    %9 = arith.mulf %8, %7 : vector<8x32xf32>
    %10 = math.tanh %9 : vector<8x32xf32>
    %cst_8 = arith.constant 5.000000e-01 : f32
    %11 = vector.broadcast %cst_8 : f32 to vector<8x32xf32>
    %12 = arith.mulf %11, %10 : vector<8x32xf32>
    %cst_9 = arith.constant 5.000000e-01 : f32
    %13 = vector.broadcast %cst_9 : f32 to vector<8x32xf32>
    %14 = arith.addf %12, %13 : vector<8x32xf32>
    %15 = vector.extract_strided_slice %6 {offsets = [0, 32], sizes = [8, 32], strides = [1, 1]} : vector<8x128xf32> to vector<8x32xf32>
    %cst_10 = arith.constant 5.000000e-01 : f32
    %16 = vector.broadcast %cst_10 : f32 to vector<8x32xf32>
    %17 = arith.mulf %16, %15 : vector<8x32xf32>
    %18 = math.tanh %17 : vector<8x32xf32>
    %cst_11 = arith.constant 5.000000e-01 : f32
    %19 = vector.broadcast %cst_11 : f32 to vector<8x32xf32>
    %20 = arith.mulf %19, %18 : vector<8x32xf32>
    %cst_12 = arith.constant 5.000000e-01 : f32
    %21 = vector.broadcast %cst_12 : f32 to vector<8x32xf32>
    %22 = arith.addf %20, %21 : vector<8x32xf32>
    %23 = vector.extract_strided_slice %6 {offsets = [0, 64], sizes = [8, 32], strides = [1, 1]} : vector<8x128xf32> to vector<8x32xf32>
    %24 = math.tanh %23 : vector<8x32xf32>
    %25 = arith.mulf %22, %1 : vector<8x32xf32>
    %26 = arith.mulf %14, %24 : vector<8x32xf32>
    %27 = arith.addf %25, %26 : vector<8x32xf32>
    %28 = vector.extract_strided_slice %6 {offsets = [0, 96], sizes = [8, 32], strides = [1, 1]} : vector<8x128xf32> to vector<8x32xf32>
    %c0_13 = arith.constant 0 : index
    %c0_14 = arith.constant 0 : index
    %29 = vector.load %arg4[%c0_13, %c0_14] : memref<32x32xf32, #tpu.memory_space<vmem>>, vector<32x32xf32>
    %cst_15 = arith.constant dense<0.000000e+00> : vector<8x32xf32>
    %30 = tpu.matmul %27, %29, %cst_15 {dimension_numbers = #tpu.dot_dimension_numbers<[1], [0], [0], [1], [0, 0, 1, 1], [], []>} : vector<8x32xf32>, vector<32x32xf32>, vector<8x32xf32> -> vector<8x32xf32>
    %31 = arith.addf %28, %30 : vector<8x32xf32>
    %32 = math.tanh %27 : vector<8x32xf32>
    %cst_16 = arith.constant 5.000000e-01 : f32
    %33 = vector.broadcast %cst_16 : f32 to vector<8x32xf32>
    %34 = arith.mulf %33, %31 : vector<8x32xf32>
    %35 = math.tanh %34 : vector<8x32xf32>
    %cst_17 = arith.constant 5.000000e-01 : f32
    %36 = vector.broadcast %cst_17 : f32 to vector<8x32xf32>
    %37 = arith.mulf %36, %35 : vector<8x32xf32>
    %cst_18 = arith.constant 5.000000e-01 : f32
    %38 = vector.broadcast %cst_18 : f32 to vector<8x32xf32>
    %39 = arith.addf %37, %38 : vector<8x32xf32>
    %40 = arith.mulf %39, %32 : vector<8x32xf32>
    %41 = arith.mulf %40, %32 : vector<8x32xf32>
    %cst_19 = arith.constant 0.000000e+00 : f32
    %42 = vector.broadcast %cst_19 : f32 to vector<8x32xf32>
    %43 = tpu.concatenate %40, %41, %27, %42 in 1 : vector<8x32xf32>, vector<8x32xf32>, vector<8x32xf32>, vector<8x32xf32> -> vector<8x128xf32>
    %c0_20 = arith.constant 0 : index
    %c0_21 = arith.constant 0 : index
    %44 = vector.load %arg5[%c0_20, %c0_21] : memref<8x128xf32, #tpu.memory_space<vmem>>, vector<8x128xf32>
    tpu.vector_store %arg5[%c0_20, %c0_21], %43 {strides = array<i32>} : memref<8x128xf32, #tpu.memory_space<vmem>>, vector<8x128xf32>,
    return
  }
}

</mosaic_0001>

<bundles_post_ra>
// kernel: tpu_custom_call.1
= control target key start
LH: loop header
LB: loop body
LE: loop exit
PB: predicated region body
PF: predicated region fallthrough
CT: control target
= control target key end

     0   :  { %10 = vsyncpa [#allocation3], 0  ;;  %s641_s0 = inlined_call_operand.hbm [shape: f32[8,68], index: 0, kind: input, shape index: {}]   ;;  %s642_s1 = inlined_call_operand.hbm [shape: f32[8,32], index: 1, kind: input, shape index: {}]   ;;  %s643_s2 = inlined_call_operand.hbm [shape: f32[68,128], index: 2, kind: input, shape index: {}]   ;;  %s644_s3 = inlined_call_operand.vmem [shape: f32[1,128], index: 3, kind: input, shape index: {}]   ;;  %s645_s4 = inlined_call_operand.hbm [shape: f32[32,32], index: 4, kind: input, shape index: {}]   ;;  %s646_s5 = inlined_call_operand.hbm [shape: f32[8,128], index: 5, kind: output, shape index: {}]  }
   0x1   :  { %11 = vsyncpa [#allocation6], 0 }
   0x2   :  { %12 = vsyncpa [#allocation9], 0 }
   0x3   :  { %13 = vsyncpa [#allocation4], 0  ;;  %s526_s18 = smov [#allocation5]   ;;  %s527_s20 = smov [#allocation2]  }
   0x4   :  { %s30_s19 = sshll.u32 %s526_s18, 4  ;;  %s20_s21 = sshll.u32 %s527_s20, 4  ;;  %s31_s19 = int_to_ptr.vmem [resolvable:$true] %s30_s19  ;;  %s21_s21 = int_to_ptr.vmem [resolvable:$true] %s20_s21 }
   0x5   :  { %s408_s24 = scalar_lea.hbm %s642_s1, 128 }
   0x6   :  { %p409_p0 = scmp.ne.s32.totalorder %s642_s1, %s408_s24  ;;  %p412_p1 = scmp.lt.u32.totalorder %s408_s24, %s642_s1 }
   0x8   :  { %p414_p2 = pnand %p412_p1, %p409_p0 }
   0xa   :  { %417 = shalt.err (!%p414_p2)
}
   0xb   :  { %s418_s29 = scalar_lea.vmem %s31_s19, 128  ;;  %p423_p4 = scmp.lt.s32.totalorder %s31_s19, %s31_s19 }
   0xc   :  { %p419_p3 = scmp.ne.s32.totalorder %s31_s19, %s418_s29  ;;  %p424_p5 = scmp.lt.s32.totalorder %s418_s29, %s418_s29 }
   0xe   :  { %p425_p6 = por %p424_p5, %p423_p4 }
  0x10   :  { %p426_p7 = pnand %p425_p6, %p419_p3 }
  0x12   :  { %429 = shalt.err (!%p426_p7)
}
  0x13   :  { %33 = dma.hbm_to_vmem [thread:$0]  %s642_s1, 128, %s31_s19, [#allocation6]  }
  0x14   :  { %s430_s9 = scalar_lea.hbm %s641_s0, 128 }
  0x15   :  { %p431_p8 = scmp.ne.s32.totalorder %s641_s0, %s430_s9  ;;  %p434_p9 = scmp.lt.u32.totalorder %s430_s9, %s641_s0 }
  0x17   :  { %p436_p10 = pnand %p434_p9, %p431_p8 }
  0x19   :  { %439 = shalt.err (!%p436_p10)
}
  0x1a   :  { %s440_s14 = scalar_lea.vmem %s21_s21, 128  ;;  %p445_p12 = scmp.lt.s32.totalorder %s21_s21, %s21_s21 }
  0x1b   :  { %p441_p11 = scmp.ne.s32.totalorder %s21_s21, %s440_s14  ;;  %p446_p13 = scmp.lt.s32.totalorder %s440_s14, %s440_s14 }
  0x1d   :  { %p447_p0 = por %p446_p13, %p445_p12 }
  0x1f   :  { %p448_p1 = pnand %p447_p0, %p441_p11 }
  0x21   :  { %451 = shalt.err (!%p448_p1)
}
  0x22   :  { %23 = dma.hbm_to_vmem [thread:$0]  %s641_s0, 128, %s21_s21, [#allocation3]  }
  0x23   :  { %s528_s16 = smov [#allocation7]   ;;  %s452_s20 = scalar_lea.hbm %s643_s2, 1152 }
  0x24   :  { %s39_s17 = sshll.u32 %s528_s16, 4  ;;  %p453_p2 = scmp.ne.s32.totalorder %s643_s2, %s452_s20  ;;  %s40_s17 = int_to_ptr.vmem [resolvable:$true] %s39_s17 }
  0x25   :  { %p456_p3 = scmp.lt.u32.totalorder %s452_s20, %s643_s2 }
  0x27   :  { %p458_p4 = pnand %p456_p3, %p453_p2 }
  0x29   :  { %461 = shalt.err (!%p458_p4)
}
  0x2a   :  { %s462_s26 = scalar_lea.vmem %s40_s17, 1152  ;;  %p467_p6 = scmp.lt.s32.totalorder %s40_s17, %s40_s17 }
  0x2b   :  { %p463_p5 = scmp.ne.s32.totalorder %s40_s17, %s462_s26  ;;  %p468_p7 = scmp.lt.s32.totalorder %s462_s26, %s462_s26 }
  0x2d   :  { %p469_p8 = por %p468_p7, %p467_p6 }
  0x2f   :  { %p470_p9 = pnand %p469_p8, %p463_p5 }
  0x31   :  { %473 = shalt.err (!%p470_p9)
}
  0x32   :  { %s529_s0 = smov 128   ;;  %s530_s21 = smov 8  }
  0x33   :  { %45 = dma.hbm_to_vmem [thread:$0]  %s643_s2, 1152, %s40_s17, [#allocation6], %s529_s0, %s529_s0, %s530_s21  }
  0x34   :  { %s531_s29 = smov [#allocation8]   ;;  %s474_s8 = scalar_lea.hbm %s645_s4, 512 }
  0x35   :  { %s53_s30 = sshll.u32 %s531_s29, 4  ;;  %p475_p10 = scmp.ne.s32.totalorder %s645_s4, %s474_s8  ;;  %s54_s30 = int_to_ptr.vmem [resolvable:$true] %s53_s30 }
  0x36   :  { %p478_p11 = scmp.lt.u32.totalorder %s474_s8, %s645_s4 }
  0x38   :  { %p480_p12 = pnand %p478_p11, %p475_p10 }
  0x3a   :  { %483 = shalt.err (!%p480_p12)
}
  0x3b   :  { %s484_s13 = scalar_lea.vmem %s54_s30, 512  ;;  %p489_p0 = scmp.lt.s32.totalorder %s54_s30, %s54_s30 }
  0x3c   :  { %p485_p13 = scmp.ne.s32.totalorder %s54_s30, %s484_s13  ;;  %p490_p1 = scmp.lt.s32.totalorder %s484_s13, %s484_s13 }
  0x3e   :  { %p491_p2 = por %p490_p1, %p489_p0 }
  0x40   :  { %p492_p3 = pnand %p491_p2, %p485_p13 }
  0x42   :  { %495 = shalt.err (!%p492_p3)
}
  0x43   :  { %59 = dma.hbm_to_vmem [thread:$0]  %s645_s4, 512, %s54_s30, [#allocation9], %s529_s0, %s529_s0, %s530_s21  }
  0x44   :  { %518 = dma.done.wait [#allocation3], 128  }
  0x45   :  { %519 = vsyncadd [#allocation3], 4294967168 }
  0x46   :  { %520 = dma.done.wait [#allocation6], 1280  }
  0x47   :  { %521 = vsyncadd [#allocation6], 4294966016 }
  0x48   :  { %522 = dma.done.wait [#allocation9], 512  }
  0x49   :  { %523 = vsyncadd [#allocation9], 4294966784  ;;  %v532_v0 = vmov 0.0|0.0   ;;  %vm533_vm0 = vmmov 0   ;;  %v534_v1 = vmov 0.0   ;;  %v74_v2 = vld [vmem:[#allocation7] sm:$0xff] }
  0x4a   :  { %369 = vmatprep.subr.bf16.mxu0 %v532_v0  ;;  %355 = vmatprep.mubr.msk.f32.mxu0 %vm533_vm0, %v534_v1  ;;  %v75_v3 = vld [vmem:[#allocation7 + $0x8] sm:$0xff]  ;;  %v76_v4 = vld [vmem:[#allocation7 + $0x10] sm:$0xff]  ;;  %v77_v6 = vld [vmem:[#allocation7 + $0x18] sm:$0xff]  ;;  %vm94_vm1 = vcmask 1043456   ;;  %vm90_vm2 = vcmask 556032   ;;  %s535_s15 = smov 64  }
  0x4b   :  { %381 = vmatprep.subr.bf16.mxu1 %v532_v0  ;;  %366 = vmatprep.mubr.msk.f32.mxu1 %vm533_vm0, %v534_v1  ;;  %v370_v5 = vpack.c.bf16 %v75_v3, %v74_v2  ;;  %v373_v7 = vpack.c.bf16 %v77_v6, %v76_v4  ;;  %v78_v8 = vld [vmem:[#allocation7 + $0x20] sm:$0xff]  ;;  %v79_v9 = vld [vmem:[#allocation7 + $0x28] sm:$0xff]  ;;  %v80_v11 = vld [vmem:[#allocation7 + $0x30] sm:$0xff]  ;;  %s536_s16 = smov 32   ;;  %vm195_vm3 = vcmask 261120   ;;  %vm296_vm4 = vcmask 523264  }
  0x4c   :  { %v376_v10 = vpack.c.bf16 %v79_v9, %v78_v8  ;;  %v81_v12 = vld [vmem:[#allocation7 + $0x38] sm:$0xff]  ;;  %v82_v14 = vld [vmem:[#allocation7 + $0x40] sm:$0xf]  ;;  %v72_v15 = vld [vmem:[#allocation2] sm:$0xff]  ;;  %s538_s17 = smov [#allocation10]   ;;  %vm298_vm5 = vcmask 785408  }
  0x4d   :  { %371 = vmatpush3.bf16.msra.mxu0 %v370_v5  ;;  %v379_v13 = vpack.c.bf16 %v81_v12, %v80_v11  ;;  %v318_v16 = vld [vmem:[%s644_s3] ss:$0 sm:$0xff]  ;;  %v73_v21 = vld [vmem:[#allocation5] sm:$0xff]  ;;  %v188_v28 = vld [vmem:[#allocation8] sm:$0xff]  ;;  %s537_s3 = smov 96   ;;  %s307_s18 = sshll.u32 %s538_s17, 4  ;;  %s308_s18 = int_to_ptr.vmem [resolvable:$true] %s307_s18 }
  0x4e   :  { %372 = vmatprep.subr.bf16.mxu0 %v532_v0  ;;  %v189_v29 = vld [vmem:[#allocation8 + $0x8] sm:$0xff]  ;;  %v190_v30 = vld [vmem:[#allocation8 + $0x10] sm:$0xff]  ;;  %v191_v32 = vld [vmem:[#allocation8 + $0x18] sm:$0xff]  ;;  %s496_s19 = scalar_lea.vmem %s308_s18, 128  ;;  %p501_p5 = scmp.lt.s32.totalorder %s308_s18, %s308_s18 }
  0x4f   :  { %v382_v31 = vpack.c.bf16 %v189_v29, %v188_v28  ;;  %v385_v33 = vpack.c.bf16 %v191_v32, %v190_v30  ;;  %p497_p4 = scmp.ne.s32.totalorder %s308_s18, %s496_s19  ;;  %p502_p6 = scmp.lt.s32.totalorder %s496_s19, %s496_s19 }
  0x51   :  { %374 = vmatpush3.bf16.msra.mxu0 %v373_v7  ;;  %383 = vmatpush3.bf16.msra.mxu1 %v382_v31  ;;  %p503_p7 = por %p502_p6, %p501_p5 }
  0x52   :  { %375 = vmatprep.subr.bf16.mxu0 %v532_v0  ;;  %384 = vmatprep.subr.bf16.mxu1 %v532_v0 }
  0x53   :  { %p504_p8 = pnand %p503_p7, %p497_p4 }
  0x55   :  { %377 = vmatpush3.bf16.msra.mxu0 %v376_v10  ;;  %386 = vmatpush3.bf16.msra.mxu1 %v385_v33 }
  0x56   :  { %378 = vmatprep.subr.bf16.mxu0 %v532_v0 }
  0x59   :  { %380 = vmatpush3.bf16.msra.mxu0 %v379_v13 }
  0x5a   :  { %353 = vmatprep.subr.mxu0 %v534_v1 }
  0x5d   :  { %354 = vmatpush3.msk.msra.mxu0 %vm94_vm1, %v82_v14 }
  0x5e   :  { %356 = vmatmul.mubr.msk.f32.vlgmr.msra.gmra.mrb[0].mxu0 %vm90_vm2, %v72_v15 }
 0x131   :  { %v164_v17 = vpop.f32.mrb[0].mxu0 }
 0x132   :  { %v165_v18 = vadd.f32 %v318_v16, %v164_v17  ;;  %v357_v19 = vpop.f32.mrb[1].mxu0 }
 0x134   :  { %400 = vtanh.f32 %v165_v18  ;;  %v168_v22 = vmul.f32 0.5, %v165_v18 }
 0x136   :  { %402 = vtanh.f32 %v168_v22 }
 0x13e   :  { %v401_v20 = vpop.eup %400 }
 0x13f   :  { %179 = vrot.lane.b32.xlu0 %v401_v20, %s535_s15 }
 0x140   :  { %v403_v23 = vpop.eup %402 }
 0x141   :  { %v170_v24 = vmul.f32 0.5, %v403_v23 }
 0x143   :  { %174 = vrot.lane.b32.xlu0 %v73_v21, %s536_s16  ;;  %v171_v25 = vadd.f32 0.5, %v170_v24 }
 0x1b1   :  { %v180_v26 = vpop.permute.xlu0 %179 }
 0x1b2   :  { %v182_v27 = vmul.f32 %v180_v26, %v171_v25 }
 0x1b4   :  { %184 = vrot.lane.b32.xlu1 %v182_v27, %s536_s16 }
 0x1b5   :  { %v175_v34 = vpop.permute.xlu0 %174 }
 0x1b6   :  { %v177_v35 = vmul.f32 %v175_v34, %v171_v25 }
 0x226   :  { %v185_v36 = vpop.permute.xlu1 %184 }
 0x227   :  { %v187_v37 = vadd.f32 %v185_v36, %v177_v35 }
 0x229   :  { %404 = vtanh.f32 %v187_v37  ;;  %193 = vrot.lane.b32.xlu1 %v187_v37, %s537_s3 }
 0x233   :  { %v405_v38 = vpop.eup %404 }
 0x234   :  { %279 = vrot.lane.b32.xlu1 %v405_v38, %s535_s15 }
 0x29b   :  { %v194_v39 = vpop.permute.xlu1 %193 }
 0x29c   :  { %367 = vmatmul.mubr.msk.f32.vlgmr.msra.gmra.mrb[0].mxu1 %vm195_vm3, %v194_v39 }
 0x2a6   :  { %v280_v48 = vpop.permute.xlu1 %279 }
 0x36f   :  { %v264_v40 = vpop.f32.mrb[0].mxu1 }
 0x370   :  { %269 = vrot.lane.b32.xlu0 %v264_v40, %s537_s3  ;;  %v368_v41 = vpop.f32.mrb[1].mxu1 }
 0x3e2   :  { %v270_v42 = vpop.permute.xlu0 %269 }
 0x3e3   :  { %v272_v43 = vadd.f32 %v270_v42, %v165_v18 }
 0x3e5   :  { %v274_v44 = vmul.f32 0.5, %v272_v43 }
 0x3e7   :  { %406 = vtanh.f32 %v274_v44 }
 0x3f1   :  { %v407_v45 = vpop.eup %406 }
 0x3f2   :  { %v276_v46 = vmul.f32 0.5, %v407_v45 }
 0x3f4   :  { %v277_v47 = vadd.f32 0.5, %v276_v46 }
 0x3f6   :  { %v282_v49 = vmul.f32 %v280_v48, %v277_v47 }
 0x3f8   :  { %285 = vrot.lane.b32.xlu0 %v282_v49, %s536_s16  ;;  %v283_v50 = vmul.f32 %v282_v49, %v280_v48 }
 0x3fa   :  { %289 = vrot.lane.b32.xlu1 %v283_v50, %s535_s15 }
 0x3fc   :  { %292 = vrot.lane.b32.xlu0 %v187_v37, %s536_s16 }
 0x46a   :  { %v286_v51 = vpop.permute.xlu0 %285 }
 0x46c   :  { %v290_v52 = vpop.permute.xlu1 %289 }
 0x46d   :  { %v295_v53 = vsel %vm195_vm3, %v286_v51, %v290_v52 }
 0x46e   :  { %v293_v54 = vpop.permute.xlu0 %292 }
 0x46f   :  { %v297_v55 = vsel %vm296_vm4, %v295_v53, %v293_v54 }
 0x470   :  { %v299_v56 = vsel %vm298_vm5, %v297_v55, 0.0 }
 0x471   :  { %300 = vst [vmem:[#allocation10] sm:$0xff] %v299_v56 }
 0x472   :  { %507 = shalt.err (!%p504_p8)
}
 0x473   :  { %s508_s23 = scalar_lea.hbm %s646_s5, 128 }
 0x474   :  { %p509_p9 = scmp.ne.s32.totalorder %s646_s5, %s508_s23  ;;  %p512_p10 = scmp.lt.u32.totalorder %s508_s23, %s646_s5 }
 0x476   :  { %p514_p11 = pnand %p512_p10, %p509_p9 }
 0x478   :  { %517 = shalt.err (!%p514_p11)
}
 0x479   :  { %310 = dma.vmem_to_hbm [thread:$0]  %s308_s18, 128, %s646_s5, [#allocation4]  }
 0x47a   :  { %524 = dma.done.wait [#allocation4], 128  }
 0x47b   :  { %525 = vsyncadd [#allocation4], 4294967168 }
 0x47c   :  { %314 = vsyncpa [#allocation3], 1 }
 0x47d   :  { %315 = vsyncpa [#allocation6], 1 }
 0x47e   :  { %316 = vsyncpa [#allocation9], 1 }
 0x47f   :  { %317 = vsyncpa [#allocation4], 1 }

</bundles_post_ra>
